<compile_context>
chip_gen: v6e
topology: v6e:2x2x1
jax: 0.10.0
libtpu: 0.0.40
codegen_flags: <defaults>
</compile_context>

<pallas_src>
import jax
import jax.numpy as jnp
from jax.experimental import pallas as pl
from jax.experimental.pallas import tpu as pltpu


def _full_spec(arr_or_shape):
    """Full-array BlockSpec (single grid point)."""
    shape = arr_or_shape.shape if hasattr(arr_or_shape, "shape") else tuple(arr_or_shape)
    ndim = len(shape)
    return pl.BlockSpec(shape, lambda: (0,) * ndim)


def _make_stacked_lstm_kernel(num_layers, hidden):
    """Build the fused stacked-LSTM kernel for a static layer count."""

    def kernel(*refs):
        # refs = (x, h0, c0, w_0..w_{L-1}, b_0..b_{L-1}, h1_out, c1_out)
        x_ref, h0_ref, c0_ref = refs[:3]
        w_refs = refs[3:3 + num_layers]
        b_refs = refs[3 + num_layers:3 + 2 * num_layers]
        h1_ref, c1_ref = refs[3 + 2 * num_layers:3 + 2 * num_layers + 2]

        H = hidden
        x = x_ref[...]  # (B, In) activation for layer 0

        # Static unrolled layer loop: each iteration is one LSTMCell step.
        for layer in range(num_layers):
            h_prev = h0_ref[layer]                      # (B, H)
            c_prev = c0_ref[layer].astype(jnp.float32)  # (B, H) f32 carry

            # Single fused matmul: gates = [x, h] @ [W_ih; W_hh]  (K = In + H)
            xh = jnp.concatenate([x, h_prev], axis=1)   # (B, In + H)
            gates = jnp.dot(xh, w_refs[layer][...],
                            preferred_element_type=jnp.float32)
            gates = gates + b_refs[layer][...].astype(jnp.float32)  # (B, 4H)

            i_g = jax.nn.sigmoid(gates[:, 0 * H:1 * H])
            f_g = jax.nn.sigmoid(gates[:, 1 * H:2 * H])
            g_g = jnp.tanh(gates[:, 2 * H:3 * H])
            o_g = jax.nn.sigmoid(gates[:, 3 * H:4 * H])

            c_new = f_g * c_prev + i_g * g_g
            h_new = o_g * jnp.tanh(c_new)

            h1_ref[layer] = h_new.astype(h1_ref.dtype)
            c1_ref[layer] = c_new.astype(c1_ref.dtype)

            # Dropout between layers: identity in eval mode.
            x = h_new.astype(x.dtype)

    return kernel


def stacked_lstm_step(x, h0, c0, weights, biases):
    """One fused StackedLSTM timestep.

    x:       (B, In)
    h0, c0:  (num_layers, B, H)
    weights: list of num_layers arrays, layer l: (In_l + H, 4H) with
             In_0 = In and In_l = H for l >= 1 (pre-concatenated [W_ih; W_hh]).
    biases:  list of num_layers arrays, each (1, 4H) = b_ih + b_hh.

    Returns (out, (h1, c1)) matching the PyTorch module.
    """
    num_layers, B, H = h0.shape
    kernel = _make_stacked_lstm_kernel(num_layers, H)

    in_specs = ([_full_spec(x), _full_spec(h0), _full_spec(c0)]
                + [_full_spec(w) for w in weights]
                + [_full_spec(b) for b in biases])
    out_specs = (_full_spec((num_layers, B, H)), _full_spec((num_layers, B, H)))

    h1, c1 = pl.pallas_call(
        kernel,
        out_shape=(jax.ShapeDtypeStruct((num_layers, B, H), x.dtype),
                   jax.ShapeDtypeStruct((num_layers, B, H), jnp.float32)),
        in_specs=in_specs,
        out_specs=out_specs,
        compiler_params=pltpu.CompilerParams(vmem_limit_bytes=64 << 20),
    )(x, h0, c0, *weights, *biases)

    # Module returns the last layer's hidden state as `output` (no dropout
    # applied after the final layer).
    return h1[num_layers - 1], (h1, c1)


class StackedLSTMPallas:
    """JAX/Pallas port of the PyTorch StackedLSTM forward pass (eval mode)."""

    def __init__(self, input_size, rnn_size, num_layers=2, dropout=0.3,
                 key=None, dtype=jnp.float32):
        self.num_layers = num_layers
        self.rnn_size = rnn_size
        self.dropout = dropout  # eval mode: identity
        if key is None:
            key = jax.random.PRNGKey(0)

        self.weights = []  # per layer: (In_l + H, 4H)  == concat([W_ih^T; W_hh^T])
        self.biases = []   # per layer: (1, 4H)         == b_ih + b_hh
        in_sz = input_size
        for _ in range(num_layers):
            key, k1, k2, k3, k4 = jax.random.split(key, 5)
            bound = 1.0 / jnp.sqrt(rnn_size)
            # PyTorch stores (4H, in); we keep the transpose (in, 4H) and
            # concatenate the two weight blocks along the K axis so the kernel
            # does a single MXU dot per layer.
            w_ih_t = jax.random.uniform(k1, (in_sz, 4 * rnn_size), dtype,
                                        -bound, bound)
            w_hh_t = jax.random.uniform(k2, (rnn_size, 4 * rnn_size), dtype,
                                        -bound, bound)
            b_ih = jax.random.uniform(k3, (4 * rnn_size,), dtype, -bound, bound)
            b_hh = jax.random.uniform(k4, (4 * rnn_size,), dtype, -bound, bound)
            self.weights.append(jnp.concatenate([w_ih_t, w_hh_t], axis=0))
            self.biases.append((b_ih + b_hh).reshape(1, -1))
            in_sz = rnn_size

    def __call__(self, inp, hidden):
        h_0, c_0 = hidden  # each: (num_layers, batch, rnn_size)
        return stacked_lstm_step(inp, h_0, c_0, self.weights, self.biases)


if __name__ == "__main__":
    batch = 8
    input_size = 128
    rnn_size = 128
    num_layers = 2

    key = jax.random.PRNGKey(0)
    k_in, k_h, k_c, k_params = jax.random.split(key, 4)
    x = jax.random.normal(k_in, (batch, input_size), jnp.float32)
    h0 = jax.random.normal(k_h, (num_layers, batch, rnn_size), jnp.float32)
    c0 = jax.random.normal(k_c, (num_layers, batch, rnn_size), jnp.float32)

    model = StackedLSTMPallas(input_size, rnn_size, num_layers=num_layers,
                              key=k_params)

    out, (h1, c1) = model(x, (h0, c0))
    jax.block_until_ready((out, h1, c1))

    # Pure-JAX reference check of the stacked LSTM math (same params).
    def ref_forward(x, h0, c0):
        h_l, c_l = [], []
        inp = x
        H = rnn_size
        for i in range(num_layers):
            w = model.weights[i]
            b = model.biases[i]
            gates = jnp.concatenate([inp, h0[i]], axis=1) @ w + b
            ig = jax.nn.sigmoid(gates[:, 0 * H:1 * H])
            fg = jax.nn.sigmoid(gates[:, 1 * H:2 * H])
            gg = jnp.tanh(gates[:, 2 * H:3 * H])
            og = jax.nn.sigmoid(gates[:, 3 * H:4 * H])
            c_new = fg * c0[i] + ig * gg
            h_new = og * jnp.tanh(c_new)
            inp = h_new
            h_l.append(h_new)
            c_l.append(c_new)
        return inp, jnp.stack(h_l), jnp.stack(c_l)

    out_ref, h_ref, c_ref = ref_forward(x, h0, c0)
    assert jnp.allclose(out, out_ref, atol=1e-5), "output mismatch"
    assert jnp.allclose(h1, h_ref, atol=1e-5), "hidden state mismatch"
    assert jnp.allclose(c1, c_ref, atol=1e-5), "cell state mismatch"

    print("KERNEL_OK")
</pallas_src>

<mosaic_0001>
module attributes {stable_mosaic.version = 11 : i64} {
  func.func @kernel(%arg0: memref<8x128xf32, #tpu.memory_space<vmem>>, %arg1: memref<2x8x128xf32, #tpu.memory_space<vmem>>, %arg2: memref<2x8x128xf32, #tpu.memory_space<vmem>>, %arg3: memref<256x512xf32, #tpu.memory_space<vmem>>, %arg4: memref<256x512xf32, #tpu.memory_space<vmem>>, %arg5: memref<1x512xf32, #tpu.memory_space<vmem>>, %arg6: memref<1x512xf32, #tpu.memory_space<vmem>>, %arg7: memref<2x8x128xf32, #tpu.memory_space<vmem>>, %arg8: memref<2x8x128xf32, #tpu.memory_space<vmem>>) attributes {dimension_semantics = [], scalar_prefetch = 0 : i64, scratch_operands = 0 : i64, tpu.core_type = #tpu.core_type<tc>} {
    %c0 = arith.constant 0 : index
    %c0_0 = arith.constant 0 : index
    %0 = vector.load %arg0[%c0, %c0_0] : memref<8x128xf32, #tpu.memory_space<vmem>>, vector<8x128xf32>
    %c0_1 = arith.constant 0 : index
    %c0_2 = arith.constant 0 : index
    %c0_3 = arith.constant 0 : index
    %1 = vector.load %arg1[%c0_1, %c0_2, %c0_3] : memref<2x8x128xf32, #tpu.memory_space<vmem>>, vector<1x8x128xf32>
    %2 = vector.shape_cast %1 : vector<1x8x128xf32> to vector<8x128xf32>
    %c0_4 = arith.constant 0 : index
    %c0_5 = arith.constant 0 : index
    %c0_6 = arith.constant 0 : index
    %3 = vector.load %arg2[%c0_4, %c0_5, %c0_6] : memref<2x8x128xf32, #tpu.memory_space<vmem>>, vector<1x8x128xf32>
    %4 = vector.shape_cast %3 : vector<1x8x128xf32> to vector<8x128xf32>
    %5 = tpu.concatenate %0, %2 in 1 : vector<8x128xf32>, vector<8x128xf32> -> vector<8x256xf32>
    %c0_7 = arith.constant 0 : index
    %c0_8 = arith.constant 0 : index
    %6 = vector.load %arg3[%c0_7, %c0_8] : memref<256x512xf32, #tpu.memory_space<vmem>>, vector<256x512xf32>
    %cst = arith.constant dense<0.000000e+00> : vector<8x512xf32>
    %7 = tpu.matmul %5, %6, %cst {dimension_numbers = #tpu.dot_dimension_numbers<[1], [0], [0], [1], [0, 0, 1, 1], [], []>} : vector<8x256xf32>, vector<256x512xf32>, vector<8x512xf32> -> vector<8x512xf32>
    %c0_9 = arith.constant 0 : index
    %c0_10 = arith.constant 0 : index
    %8 = vector.load %arg5[%c0_9, %c0_10] : memref<1x512xf32, #tpu.memory_space<vmem>>, vector<1x512xf32>
    %9 = vector.broadcast %8 : vector<1x512xf32> to vector<8x512xf32>
    %10 = arith.addf %7, %9 : vector<8x512xf32>
    %11 = vector.extract_strided_slice %10 {offsets = [0, 0], sizes = [8, 128], strides = [1, 1]} : vector<8x512xf32> to vector<8x128xf32>
    %12 = arith.negf %11 : vector<8x128xf32>
    %13 = math.exp %12 : vector<8x128xf32>
    %cst_11 = arith.constant 1.000000e+00 : f32
    %14 = vector.broadcast %cst_11 : f32 to vector<8x128xf32>
    %15 = arith.addf %14, %13 : vector<8x128xf32>
    %16 = arith.divf %14, %15 : vector<8x128xf32>
    %17 = vector.extract_strided_slice %10 {offsets = [0, 128], sizes = [8, 128], strides = [1, 1]} : vector<8x512xf32> to vector<8x128xf32>
    %18 = arith.negf %17 : vector<8x128xf32>
    %19 = math.exp %18 : vector<8x128xf32>
    %cst_12 = arith.constant 1.000000e+00 : f32
    %20 = vector.broadcast %cst_12 : f32 to vector<8x128xf32>
    %21 = arith.addf %20, %19 : vector<8x128xf32>
    %22 = arith.divf %20, %21 : vector<8x128xf32>
    %23 = vector.extract_strided_slice %10 {offsets = [0, 256], sizes = [8, 128], strides = [1, 1]} : vector<8x512xf32> to vector<8x128xf32>
    %24 = math.tanh %23 : vector<8x128xf32>
    %25 = vector.extract_strided_slice %10 {offsets = [0, 384], sizes = [8, 128], strides = [1, 1]} : vector<8x512xf32> to vector<8x128xf32>
    %26 = arith.negf %25 : vector<8x128xf32>
    %27 = math.exp %26 : vector<8x128xf32>
    %cst_13 = arith.constant 1.000000e+00 : f32
    %28 = vector.broadcast %cst_13 : f32 to vector<8x128xf32>
    %29 = arith.addf %28, %27 : vector<8x128xf32>
    %30 = arith.divf %28, %29 : vector<8x128xf32>
    %31 = arith.mulf %22, %4 : vector<8x128xf32>
    %32 = arith.mulf %16, %24 : vector<8x128xf32>
    %33 = arith.addf %31, %32 : vector<8x128xf32>
    %34 = math.tanh %33 : vector<8x128xf32>
    %35 = arith.mulf %30, %34 : vector<8x128xf32>
    %c0_14 = arith.constant 0 : index
    %c0_15 = arith.constant 0 : index
    %c0_16 = arith.constant 0 : index
    %36 = vector.load %arg7[%c0_14, %c0_15, %c0_16] : memref<2x8x128xf32, #tpu.memory_space<vmem>>, vector<1x8x128xf32>
    %37 = vector.shape_cast %36 : vector<1x8x128xf32> to vector<8x128xf32>
    %38 = vector.shape_cast %35 : vector<8x128xf32> to vector<1x8x128xf32>
    tpu.vector_store %arg7[%c0_14, %c0_15, %c0_16], %38 {strides = array<i32>} : memref<2x8x128xf32, #tpu.memory_space<vmem>>, vector<1x8x128xf32>,
    %c0_17 = arith.constant 0 : index
    %c0_18 = arith.constant 0 : index
    %c0_19 = arith.constant 0 : index
    %39 = vector.load %arg8[%c0_17, %c0_18, %c0_19] : memref<2x8x128xf32, #tpu.memory_space<vmem>>, vector<1x8x128xf32>
    %40 = vector.shape_cast %39 : vector<1x8x128xf32> to vector<8x128xf32>
    %41 = vector.shape_cast %33 : vector<8x128xf32> to vector<1x8x128xf32>
    tpu.vector_store %arg8[%c0_17, %c0_18, %c0_19], %41 {strides = array<i32>} : memref<2x8x128xf32, #tpu.memory_space<vmem>>, vector<1x8x128xf32>,
    %c1 = arith.constant 1 : index
    %c0_20 = arith.constant 0 : index
    %c0_21 = arith.constant 0 : index
    %42 = vector.load %arg1[%c1, %c0_20, %c0_21] : memref<2x8x128xf32, #tpu.memory_space<vmem>>, vector<1x8x128xf32>
    %43 = vector.shape_cast %42 : vector<1x8x128xf32> to vector<8x128xf32>
    %c1_22 = arith.constant 1 : index
    %c0_23 = arith.constant 0 : index
    %c0_24 = arith.constant 0 : index
    %44 = vector.load %arg2[%c1_22, %c0_23, %c0_24] : memref<2x8x128xf32, #tpu.memory_space<vmem>>, vector<1x8x128xf32>
    %45 = vector.shape_cast %44 : vector<1x8x128xf32> to vector<8x128xf32>
    %46 = tpu.concatenate %35, %43 in 1 : vector<8x128xf32>, vector<8x128xf32> -> vector<8x256xf32>
    %c0_25 = arith.constant 0 : index
    %c0_26 = arith.constant 0 : index
    %47 = vector.load %arg4[%c0_25, %c0_26] : memref<256x512xf32, #tpu.memory_space<vmem>>, vector<256x512xf32>
    %cst_27 = arith.constant dense<0.000000e+00> : vector<8x512xf32>
    %48 = tpu.matmul %46, %47, %cst_27 {dimension_numbers = #tpu.dot_dimension_numbers<[1], [0], [0], [1], [0, 0, 1, 1], [], []>} : vector<8x256xf32>, vector<256x512xf32>, vector<8x512xf32> -> vector<8x512xf32>
    %c0_28 = arith.constant 0 : index
    %c0_29 = arith.constant 0 : index
    %49 = vector.load %arg6[%c0_28, %c0_29] : memref<1x512xf32, #tpu.memory_space<vmem>>, vector<1x512xf32>
    %50 = vector.broadcast %49 : vector<1x512xf32> to vector<8x512xf32>
    %51 = arith.addf %48, %50 : vector<8x512xf32>
    %52 = vector.extract_strided_slice %51 {offsets = [0, 0], sizes = [8, 128], strides = [1, 1]} : vector<8x512xf32> to vector<8x128xf32>
    %53 = arith.negf %52 : vector<8x128xf32>
    %54 = math.exp %53 : vector<8x128xf32>
    %cst_30 = arith.constant 1.000000e+00 : f32
    %55 = vector.broadcast %cst_30 : f32 to vector<8x128xf32>
    %56 = arith.addf %55, %54 : vector<8x128xf32>
    %57 = arith.divf %55, %56 : vector<8x128xf32>
    %58 = vector.extract_strided_slice %51 {offsets = [0, 128], sizes = [8, 128], strides = [1, 1]} : vector<8x512xf32> to vector<8x128xf32>
    %59 = arith.negf %58 : vector<8x128xf32>
    %60 = math.exp %59 : vector<8x128xf32>
    %cst_31 = arith.constant 1.000000e+00 : f32
    %61 = vector.broadcast %cst_31 : f32 to vector<8x128xf32>
    %62 = arith.addf %61, %60 : vector<8x128xf32>
    %63 = arith.divf %61, %62 : vector<8x128xf32>
    %64 = vector.extract_strided_slice %51 {offsets = [0, 256], sizes = [8, 128], strides = [1, 1]} : vector<8x512xf32> to vector<8x128xf32>
    %65 = math.tanh %64 : vector<8x128xf32>
    %66 = vector.extract_strided_slice %51 {offsets = [0, 384], sizes = [8, 128], strides = [1, 1]} : vector<8x512xf32> to vector<8x128xf32>
    %67 = arith.negf %66 : vector<8x128xf32>
    %68 = math.exp %67 : vector<8x128xf32>
    %cst_32 = arith.constant 1.000000e+00 : f32
    %69 = vector.broadcast %cst_32 : f32 to vector<8x128xf32>
    %70 = arith.addf %69, %68 : vector<8x128xf32>
    %71 = arith.divf %69, %70 : vector<8x128xf32>
    %72 = arith.mulf %63, %45 : vector<8x128xf32>
    %73 = arith.mulf %57, %65 : vector<8x128xf32>
    %74 = arith.addf %72, %73 : vector<8x128xf32>
    %75 = math.tanh %74 : vector<8x128xf32>
    %76 = arith.mulf %71, %75 : vector<8x128xf32>
    %c1_33 = arith.constant 1 : index
    %c0_34 = arith.constant 0 : index
    %c0_35 = arith.constant 0 : index
    %77 = vector.load %arg7[%c1_33, %c0_34, %c0_35] : memref<2x8x128xf32, #tpu.memory_space<vmem>>, vector<1x8x128xf32>
    %78 = vector.shape_cast %77 : vector<1x8x128xf32> to vector<8x128xf32>
    %79 = vector.shape_cast %76 : vector<8x128xf32> to vector<1x8x128xf32>
    tpu.vector_store %arg7[%c1_33, %c0_34, %c0_35], %79 {strides = array<i32>} : memref<2x8x128xf32, #tpu.memory_space<vmem>>, vector<1x8x128xf32>,
    %c1_36 = arith.constant 1 : index
    %c0_37 = arith.constant 0 : index
    %c0_38 = arith.constant 0 : index
    %80 = vector.load %arg8[%c1_36, %c0_37, %c0_38] : memref<2x8x128xf32, #tpu.memory_space<vmem>>, vector<1x8x128xf32>
    %81 = vector.shape_cast %80 : vector<1x8x128xf32> to vector<8x128xf32>
    %82 = vector.shape_cast %74 : vector<8x128xf32> to vector<1x8x128xf32>
    tpu.vector_store %arg8[%c1_36, %c0_37, %c0_38], %82 {strides = array<i32>} : memref<2x8x128xf32, #tpu.memory_space<vmem>>, vector<1x8x128xf32>,
    return
  }
}

</mosaic_0001>

<bundles_post_ra>
// kernel: tpu_custom_call.1
= control target key start
LH: loop header
LB: loop body
LE: loop exit
PB: predicated region body
PF: predicated region fallthrough
CT: control target
= control target key end

     0   :  { %14 = vsyncpa [#allocation3], 0  ;;  %s1082_s0 = inlined_call_operand.hbm [shape: f32[8,128], index: 0, kind: input, shape index: {}]   ;;  %s1083_s1 = inlined_call_operand.hbm [shape: f32[2,8,128], index: 1, kind: input, shape index: {}]   ;;  %s1084_s2 = inlined_call_operand.hbm [shape: f32[2,8,128], index: 2, kind: input, shape index: {}]   ;;  %s1085_s3 = inlined_call_operand.hbm [shape: f32[256,512], index: 3, kind: input, shape index: {}]   ;;  %s1086_s4 = inlined_call_operand.hbm [shape: f32[256,512], index: 4, kind: input, shape index: {}]   ;;  %s1087_s5 = inlined_call_operand.vmem [shape: f32[1,512], index: 5, kind: input, shape index: {}]   ;;  %s1088_s6 = inlined_call_operand.vmem [shape: f32[1,512], index: 6, kind: input, shape index: {}]   ;;  %s1089_s7 = inlined_call_operand.hbm [shape: f32[2,8,128], index: 7, kind: output, shape index: {0}]   ;;  %s1090_s8 = inlined_call_operand.hbm [shape: f32[2,8,128], index: 8, kind: output, shape index: {1}]  }
   0x1   :  { %15 = vsyncpa [#allocation6], 0 }
   0x2   :  { %16 = vsyncpa [#allocation9], 0 }
   0x3   :  { %17 = vsyncpa [#allocation4], 0 }
   0x4   :  { %18 = vsyncpa [#allocation13], 0  ;;  %s975_s27 = smov [#allocation5]  }
   0x5   :  { %s34_s28 = sshll.u32 %s975_s27, 4  ;;  %s35_s28 = int_to_ptr.vmem [resolvable:$true] %s34_s28 }
   0x6   :  { %s833_s29 = scalar_lea.vmem %s35_s28, 256  ;;  %p838_p1 = scmp.lt.s32.totalorder %s35_s28, %s35_s28 }
   0x7   :  { %p834_p0 = scmp.ne.s32.totalorder %s35_s28, %s833_s29  ;;  %p839_p2 = scmp.lt.s32.totalorder %s833_s29, %s833_s29 }
   0x9   :  { %p840_p3 = por %p839_p2, %p838_p1 }
   0xb   :  { %p841_p4 = pnand %p840_p3, %p834_p0 }
   0xd   :  { %844 = shalt.err (!%p841_p4)
}
   0xe   :  { %s976_s30 = smov 128   ;;  %s977_s9 = smov 8  }
   0xf   :  { %40 = dma.hbm_to_vmem [thread:$0]  %s1083_s1, 256, %s35_s28, [#allocation6], %s976_s30, %s976_s30, %s977_s9  }
  0x10   :  { %s978_s12 = smov [#allocation8]  }
  0x11   :  { %s58_s13 = sshll.u32 %s978_s12, 4  ;;  %s59_s13 = int_to_ptr.vmem [resolvable:$true] %s58_s13 }
  0x12   :  { %s853_s14 = scalar_lea.vmem %s59_s13, 16384  ;;  %p858_p6 = scmp.lt.s32.totalorder %s59_s13, %s59_s13 }
  0x13   :  { %p854_p5 = scmp.ne.s32.totalorder %s59_s13, %s853_s14  ;;  %p859_p7 = scmp.lt.s32.totalorder %s853_s14, %s853_s14 }
  0x15   :  { %p860_p8 = por %p859_p7, %p858_p6 }
  0x17   :  { %p861_p9 = pnand %p860_p8, %p854_p5 }
  0x19   :  { %864 = shalt.err (!%p861_p9)
}
  0x1a   :  { %s979_s15 = smov 512   ;;  %s980_s16 = smov 32  }
  0x1b   :  { %64 = dma.hbm_to_vmem [thread:$0]  %s1085_s3, 16384, %s59_s13, [#allocation9], %s979_s15, %s979_s15, %s980_s16  }
  0x1c   :  { %s981_s1 = smov [#allocation2]   ;;  %s982_s20 = smov [#allocation7]  }
  0x1d   :  { %s25_s19 = sshll.u32 %s981_s1, 4  ;;  %s46_s21 = sshll.u32 %s982_s20, 4  ;;  %s26_s19 = int_to_ptr.vmem [resolvable:$true] %s25_s19  ;;  %s47_s21 = int_to_ptr.vmem [resolvable:$true] %s46_s21 }
  0x1e   :  { %s873_s22 = scalar_lea.vmem %s26_s19, 128  ;;  %p878_p11 = scmp.lt.s32.totalorder %s26_s19, %s26_s19 }
  0x1f   :  { %p874_p10 = scmp.ne.s32.totalorder %s26_s19, %s873_s22  ;;  %p879_p12 = scmp.lt.s32.totalorder %s873_s22, %s873_s22 }
  0x21   :  { %p880_p13 = por %p879_p12, %p878_p11 }
  0x23   :  { %p881_p0 = pnand %p880_p13, %p874_p10 }
  0x25   :  { %884 = shalt.err (!%p881_p0)
}
  0x26   :  { %28 = dma.hbm_to_vmem [thread:$0]  %s1082_s0, 128, %s26_s19, [#allocation3]  }
  0x27   :  { %s893_s25 = scalar_lea.vmem %s47_s21, 256  ;;  %p898_p2 = scmp.lt.s32.totalorder %s47_s21, %s47_s21 }
  0x28   :  { %p894_p1 = scmp.ne.s32.totalorder %s47_s21, %s893_s25  ;;  %p899_p3 = scmp.lt.s32.totalorder %s893_s25, %s893_s25 }
  0x2a   :  { %p900_p4 = por %p899_p3, %p898_p2 }
  0x2c   :  { %p901_p5 = pnand %p900_p4, %p894_p1 }
  0x2e   :  { %904 = shalt.err (!%p901_p5)
}
  0x2f   :  { %52 = dma.hbm_to_vmem [thread:$0]  %s1084_s2, 256, %s47_s21, [#allocation6], %s976_s30, %s976_s30, %s977_s9  }
  0x30   :  { %s983_s27 = smov [#allocation10]  }
  0x31   :  { %s70_s28 = sshll.u32 %s983_s27, 4  ;;  %s71_s28 = int_to_ptr.vmem [resolvable:$true] %s70_s28 }
  0x32   :  { %s913_s29 = scalar_lea.vmem %s71_s28, 16384  ;;  %p918_p7 = scmp.lt.s32.totalorder %s71_s28, %s71_s28 }
  0x33   :  { %p914_p6 = scmp.ne.s32.totalorder %s71_s28, %s913_s29  ;;  %p919_p8 = scmp.lt.s32.totalorder %s913_s29, %s913_s29 }
  0x35   :  { %p920_p9 = por %p919_p8, %p918_p7 }
  0x37   :  { %p921_p10 = pnand %p920_p9, %p914_p6 }
  0x39   :  { %924 = shalt.err (!%p921_p10)
}
  0x3a   :  { %76 = dma.hbm_to_vmem [thread:$0]  %s1086_s4, 16384, %s71_s28, [#allocation9], %s979_s15, %s979_s15, %s980_s16  }
  0x3b   :  { %965 = dma.done.wait [#allocation3], 128  }
  0x3c   :  { %966 = vsyncadd [#allocation3], 4294967168 }
  0x3d   :  { %967 = dma.done.wait [#allocation6], 512  }
  0x3e   :  { %968 = vsyncadd [#allocation6], 4294966784 }
  0x3f   :  { %969 = dma.done.wait [#allocation9], 32768  }
  0x40   :  { %970 = vsyncadd [#allocation9], 4294934528  ;;  %v160_v0 = vld [vmem:[#allocation8 + $0x1e8] sm:$0xff]  ;;  %v159_v1 = vld [vmem:[#allocation8 + $0x1e0] sm:$0xff] }
  0x41   :  { %v156_v2 = vld [vmem:[#allocation8 + $0x1c8] sm:$0xff]  ;;  %249 = vmatprep.subr.mxu0 %v160_v0  ;;  %v155_v3 = vld [vmem:[#allocation8 + $0x1c0] sm:$0xff]  ;;  %v162_v8 = vld [vmem:[#allocation8 + $0x1f8] sm:$0xff] }
  0x42   :  { %250 = vmatpush1.msra.mxu0 %v159_v1  ;;  %v152_v4 = vld [vmem:[#allocation8 + $0x1a8] sm:$0xff]  ;;  %v151_v5 = vld [vmem:[#allocation8 + $0x1a0] sm:$0xff]  ;;  %320 = vmatprep.subr.mxu1 %v162_v8  ;;  %v161_v10 = vld [vmem:[#allocation8 + $0x1f0] sm:$0xff] }
  0x43   :  { %251 = vmatprep.subr.mxu0 %v156_v2  ;;  %v148_v6 = vld [vmem:[#allocation8 + $0x188] sm:$0xff]  ;;  %v147_v7 = vld [vmem:[#allocation8 + $0x180] sm:$0xff]  ;;  %321 = vmatpush1.msra.mxu1 %v161_v10  ;;  %v158_v12 = vld [vmem:[#allocation8 + $0x1d8] sm:$0xff] }
  0x44   :  { %252 = vmatpush1.msra.mxu0 %v155_v3  ;;  %v144_v9 = vld [vmem:[#allocation8 + $0x168] sm:$0xff]  ;;  %v143_v11 = vld [vmem:[#allocation8 + $0x160] sm:$0xff]  ;;  %v157_v13 = vld [vmem:[#allocation8 + $0x1d0] sm:$0xff]  ;;  %322 = vmatprep.subr.mxu1 %v158_v12 }
  0x45   :  { %253 = vmatprep.subr.mxu0 %v152_v4  ;;  %v140_v14 = vld [vmem:[#allocation8 + $0x148] sm:$0xff]  ;;  %v154_v15 = vld [vmem:[#allocation8 + $0x1b8] sm:$0xff]  ;;  %v139_v16 = vld [vmem:[#allocation8 + $0x140] sm:$0xff]  ;;  %323 = vmatpush1.msra.mxu1 %v157_v13 }
  0x46   :  { %254 = vmatpush1.msra.mxu0 %v151_v5  ;;  %v153_v17 = vld [vmem:[#allocation8 + $0x1b0] sm:$0xff]  ;;  %v150_v18 = vld [vmem:[#allocation8 + $0x198] sm:$0xff]  ;;  %v136_v19 = vld [vmem:[#allocation8 + $0x128] sm:$0xff]  ;;  %324 = vmatprep.subr.mxu1 %v154_v15 }
  0x47   :  { %255 = vmatprep.subr.mxu0 %v148_v6  ;;  %v149_v20 = vld [vmem:[#allocation8 + $0x190] sm:$0xff]  ;;  %v135_v21 = vld [vmem:[#allocation8 + $0x120] sm:$0xff]  ;;  %325 = vmatpush1.msra.mxu1 %v153_v17  ;;  %v146_v22 = vld [vmem:[#allocation8 + $0x178] sm:$0xff] }
  0x48   :  { %256 = vmatpush1.msra.mxu0 %v147_v7  ;;  %v132_v23 = vld [vmem:[#allocation8 + $0x108] sm:$0xff]  ;;  %326 = vmatprep.subr.mxu1 %v150_v18  ;;  %v145_v24 = vld [vmem:[#allocation8 + $0x170] sm:$0xff]  ;;  %v131_v25 = vld [vmem:[#allocation8 + $0x100] sm:$0xff] }
  0x49   :  { %257 = vmatprep.subr.mxu0 %v144_v9  ;;  %327 = vmatpush1.msra.mxu1 %v149_v20  ;;  %v142_v26 = vld [vmem:[#allocation8 + $0x158] sm:$0xff]  ;;  %v128_v27 = vld [vmem:[#allocation8 + $0xe8] sm:$0xff]  ;;  %v141_v28 = vld [vmem:[#allocation8 + $0x150] sm:$0xff] }
  0x4a   :  { %258 = vmatpush1.msra.mxu0 %v143_v11  ;;  %328 = vmatprep.subr.mxu1 %v146_v22  ;;  %v127_v29 = vld [vmem:[#allocation8 + $0xe0] sm:$0xff]  ;;  %v138_v30 = vld [vmem:[#allocation8 + $0x138] sm:$0xff]  ;;  %v124_v31 = vld [vmem:[#allocation8 + $0xc8] sm:$0xff] }
  0x4b   :  { %259 = vmatprep.subr.mxu0 %v140_v14  ;;  %329 = vmatpush1.msra.mxu1 %v145_v24  ;;  %v137_v32 = vld [vmem:[#allocation8 + $0x130] sm:$0xff]  ;;  %v123_v33 = vld [vmem:[#allocation8 + $0xc0] sm:$0xff]  ;;  %v134_v34 = vld [vmem:[#allocation8 + $0x118] sm:$0xff] }
  0x4c   :  { %260 = vmatpush1.msra.mxu0 %v139_v16  ;;  %330 = vmatprep.subr.mxu1 %v142_v26  ;;  %v120_v35 = vld [vmem:[#allocation8 + $0xa8] sm:$0xff]  ;;  %v133_v36 = vld [vmem:[#allocation8 + $0x110] sm:$0xff]  ;;  %v119_v37 = vld [vmem:[#allocation8 + $0xa0] sm:$0xff] }
  0x4d   :  { %261 = vmatprep.subr.mxu0 %v136_v19  ;;  %331 = vmatpush1.msra.mxu1 %v141_v28  ;;  %v130_v38 = vld [vmem:[#allocation8 + $0xf8] sm:$0xff]  ;;  %v116_v39 = vld [vmem:[#allocation8 + $0x88] sm:$0xff]  ;;  %v129_v40 = vld [vmem:[#allocation8 + $0xf0] sm:$0xff] }
  0x4e   :  { %262 = vmatpush1.msra.mxu0 %v135_v21  ;;  %332 = vmatprep.subr.mxu1 %v138_v30  ;;  %v115_v41 = vld [vmem:[#allocation8 + $0x80] sm:$0xff]  ;;  %v126_v42 = vld [vmem:[#allocation8 + $0xd8] sm:$0xff]  ;;  %v112_v43 = vld [vmem:[#allocation8 + $0x68] sm:$0xff] }
  0x4f   :  { %263 = vmatprep.subr.mxu0 %v132_v23  ;;  %333 = vmatpush1.msra.mxu1 %v137_v32  ;;  %v125_v44 = vld [vmem:[#allocation8 + $0xd0] sm:$0xff]  ;;  %v111_v45 = vld [vmem:[#allocation8 + $0x60] sm:$0xff]  ;;  %v122_v46 = vld [vmem:[#allocation8 + $0xb8] sm:$0xff] }
  0x50   :  { %264 = vmatpush1.msra.mxu0 %v131_v25  ;;  %334 = vmatprep.subr.mxu1 %v134_v34  ;;  %v108_v47 = vld [vmem:[#allocation8 + $0x48] sm:$0xff]  ;;  %v121_v48 = vld [vmem:[#allocation8 + $0xb0] sm:$0xff]  ;;  %v107_v49 = vld [vmem:[#allocation8 + $0x40] sm:$0xff] }
  0x51   :  { %265 = vmatprep.subr.mxu0 %v128_v27  ;;  %335 = vmatpush1.msra.mxu1 %v133_v36  ;;  %v118_v50 = vld [vmem:[#allocation8 + $0x98] sm:$0xff]  ;;  %v104_v51 = vld [vmem:[#allocation8 + $0x28] sm:$0xff]  ;;  %v117_v52 = vld [vmem:[#allocation8 + $0x90] sm:$0xff] }
  0x52   :  { %266 = vmatpush1.msra.mxu0 %v127_v29  ;;  %336 = vmatprep.subr.mxu1 %v130_v38  ;;  %v103_v53 = vld [vmem:[#allocation8 + $0x20] sm:$0xff]  ;;  %v114_v54 = vld [vmem:[#allocation8 + $0x78] sm:$0xff]  ;;  %v100_v55 = vld [vmem:[#allocation8 + $0x8] sm:$0xff] }
  0x53   :  { %267 = vmatprep.subr.mxu0 %v124_v31  ;;  %337 = vmatpush1.msra.mxu1 %v129_v40  ;;  %v113_v56 = vld [vmem:[#allocation8 + $0x70] sm:$0xff]  ;;  %v99_v57 = vld [vmem:[#allocation8] sm:$0xff]  ;;  %v110_v58 = vld [vmem:[#allocation8 + $0x58] sm:$0xff] }
  0x54   :  { %268 = vmatpush1.msra.mxu0 %v123_v33  ;;  %338 = vmatprep.subr.mxu1 %v126_v42  ;;  %v224_v59 = vld [vmem:[#allocation8 + $0x3e8] sm:$0xff]  ;;  %v109_v60 = vld [vmem:[#allocation8 + $0x50] sm:$0xff]  ;;  %v223_v61 = vld [vmem:[#allocation8 + $0x3e0] sm:$0xff] }
  0x55   :  { %269 = vmatprep.subr.mxu0 %v120_v35  ;;  %339 = vmatpush1.msra.mxu1 %v125_v44  ;;  %v106_v62 = vld [vmem:[#allocation8 + $0x38] sm:$0xff]  ;;  %v220_v63 = vld [vmem:[#allocation8 + $0x3c8] sm:$0xff]  ;;  %v105_v0 = vld [vmem:[#allocation8 + $0x30] sm:$0xff] }
  0x56   :  { %270 = vmatpush1.msra.mxu0 %v119_v37  ;;  %340 = vmatprep.subr.mxu1 %v122_v46  ;;  %v219_v1 = vld [vmem:[#allocation8 + $0x3c0] sm:$0xff]  ;;  %v102_v2 = vld [vmem:[#allocation8 + $0x18] sm:$0xff]  ;;  %v216_v3 = vld [vmem:[#allocation8 + $0x3a8] sm:$0xff] }
  0x57   :  { %271 = vmatprep.subr.mxu0 %v116_v39  ;;  %341 = vmatpush1.msra.mxu1 %v121_v48  ;;  %v101_v4 = vld [vmem:[#allocation8 + $0x10] sm:$0xff]  ;;  %v215_v5 = vld [vmem:[#allocation8 + $0x3a0] sm:$0xff]  ;;  %v226_v6 = vld [vmem:[#allocation8 + $0x3f8] sm:$0xff] }
  0x58   :  { %272 = vmatpush1.msra.mxu0 %v115_v41  ;;  %342 = vmatprep.subr.mxu1 %v118_v50  ;;  %v212_v7 = vld [vmem:[#allocation8 + $0x388] sm:$0xff]  ;;  %v225_v8 = vld [vmem:[#allocation8 + $0x3f0] sm:$0xff]  ;;  %v211_v9 = vld [vmem:[#allocation8 + $0x380] sm:$0xff] }
  0x59   :  { %273 = vmatprep.subr.mxu0 %v112_v43  ;;  %343 = vmatpush1.msra.mxu1 %v117_v52  ;;  %v222_v10 = vld [vmem:[#allocation8 + $0x3d8] sm:$0xff]  ;;  %v208_v11 = vld [vmem:[#allocation8 + $0x368] sm:$0xff]  ;;  %v221_v12 = vld [vmem:[#allocation8 + $0x3d0] sm:$0xff] }
  0x5a   :  { %274 = vmatpush1.msra.mxu0 %v111_v45  ;;  %344 = vmatprep.subr.mxu1 %v114_v54  ;;  %v207_v13 = vld [vmem:[#allocation8 + $0x360] sm:$0xff]  ;;  %v218_v14 = vld [vmem:[#allocation8 + $0x3b8] sm:$0xff]  ;;  %v204_v15 = vld [vmem:[#allocation8 + $0x348] sm:$0xff] }
  0x5b   :  { %275 = vmatprep.subr.mxu0 %v108_v47  ;;  %345 = vmatpush1.msra.mxu1 %v113_v56  ;;  %v217_v16 = vld [vmem:[#allocation8 + $0x3b0] sm:$0xff]  ;;  %v203_v17 = vld [vmem:[#allocation8 + $0x340] sm:$0xff]  ;;  %v214_v18 = vld [vmem:[#allocation8 + $0x398] sm:$0xff] }
  0x5c   :  { %276 = vmatpush1.msra.mxu0 %v107_v49  ;;  %346 = vmatprep.subr.mxu1 %v110_v58  ;;  %v200_v19 = vld [vmem:[#allocation8 + $0x328] sm:$0xff]  ;;  %v213_v20 = vld [vmem:[#allocation8 + $0x390] sm:$0xff]  ;;  %v199_v21 = vld [vmem:[#allocation8 + $0x320] sm:$0xff] }
  0x5d   :  { %277 = vmatprep.subr.mxu0 %v104_v51  ;;  %347 = vmatpush1.msra.mxu1 %v109_v60  ;;  %v210_v22 = vld [vmem:[#allocation8 + $0x378] sm:$0xff]  ;;  %v196_v23 = vld [vmem:[#allocation8 + $0x308] sm:$0xff]  ;;  %v209_v24 = vld [vmem:[#allocation8 + $0x370] sm:$0xff] }
  0x5e   :  { %278 = vmatpush1.msra.mxu0 %v103_v53  ;;  %348 = vmatprep.subr.mxu1 %v106_v62  ;;  %v195_v25 = vld [vmem:[#allocation8 + $0x300] sm:$0xff]  ;;  %v206_v26 = vld [vmem:[#allocation8 + $0x358] sm:$0xff]  ;;  %v192_v27 = vld [vmem:[#allocation8 + $0x2e8] sm:$0xff] }
  0x5f   :  { %279 = vmatprep.subr.mxu0 %v100_v55  ;;  %349 = vmatpush1.msra.mxu1 %v105_v0  ;;  %v205_v28 = vld [vmem:[#allocation8 + $0x350] sm:$0xff]  ;;  %v191_v29 = vld [vmem:[#allocation8 + $0x2e0] sm:$0xff]  ;;  %v202_v30 = vld [vmem:[#allocation8 + $0x338] sm:$0xff] }
  0x60   :  { %280 = vmatpush1.msra.mxu0 %v99_v57  ;;  %350 = vmatprep.subr.mxu1 %v102_v2  ;;  %v188_v31 = vld [vmem:[#allocation8 + $0x2c8] sm:$0xff]  ;;  %v201_v32 = vld [vmem:[#allocation8 + $0x330] sm:$0xff]  ;;  %v187_v33 = vld [vmem:[#allocation8 + $0x2c0] sm:$0xff] }
  0x61   :  { %281 = vmatprep.subr.mxu0 %v224_v59  ;;  %351 = vmatpush1.msra.mxu1 %v101_v4  ;;  %v198_v34 = vld [vmem:[#allocation8 + $0x318] sm:$0xff]  ;;  %v184_v35 = vld [vmem:[#allocation8 + $0x2a8] sm:$0xff]  ;;  %v97_v36 = vld [vmem:[#allocation5] sm:$0xff] }
  0x62   :  { %282 = vmatpush2.msra.mxu0 %v223_v61  ;;  %352 = vmatprep.subr.mxu1 %v226_v6  ;;  %v183_v37 = vld [vmem:[#allocation8 + $0x2a0] sm:$0xff]  ;;  %v197_v38 = vld [vmem:[#allocation8 + $0x310] sm:$0xff]  ;;  %v180_v39 = vld [vmem:[#allocation8 + $0x288] sm:$0xff] }
  0x63   :  { %283 = vmatprep.subr.mxu0 %v220_v63  ;;  %353 = vmatpush2.msra.mxu1 %v225_v8  ;;  %v194_v40 = vld [vmem:[#allocation8 + $0x2f8] sm:$0xff]  ;;  %v179_v41 = vld [vmem:[#allocation8 + $0x280] sm:$0xff]  ;;  %v193_v42 = vld [vmem:[#allocation8 + $0x2f0] sm:$0xff] }
  0x64   :  { %284 = vmatpush2.msra.mxu0 %v219_v1  ;;  %354 = vmatprep.subr.mxu1 %v222_v10  ;;  %v176_v43 = vld [vmem:[#allocation8 + $0x268] sm:$0xff]  ;;  %v190_v44 = vld [vmem:[#allocation8 + $0x2d8] sm:$0xff]  ;;  %v175_v45 = vld [vmem:[#allocation8 + $0x260] sm:$0xff] }
  0x65   :  { %285 = vmatprep.subr.mxu0 %v216_v3  ;;  %355 = vmatpush2.msra.mxu1 %v221_v12  ;;  %v189_v46 = vld [vmem:[#allocation8 + $0x2d0] sm:$0xff]  ;;  %v172_v47 = vld [vmem:[#allocation8 + $0x248] sm:$0xff]  ;;  %v186_v48 = vld [vmem:[#allocation8 + $0x2b8] sm:$0xff] }
  0x66   :  { %286 = vmatpush2.msra.mxu0 %v215_v5  ;;  %356 = vmatprep.subr.mxu1 %v218_v14  ;;  %v171_v49 = vld [vmem:[#allocation8 + $0x240] sm:$0xff]  ;;  %v185_v50 = vld [vmem:[#allocation8 + $0x2b0] sm:$0xff]  ;;  %v168_v51 = vld [vmem:[#allocation8 + $0x228] sm:$0xff] }
  0x67   :  { %287 = vmatprep.subr.mxu0 %v212_v7  ;;  %357 = vmatpush2.msra.mxu1 %v217_v16  ;;  %v182_v52 = vld [vmem:[#allocation8 + $0x298] sm:$0xff]  ;;  %v167_v53 = vld [vmem:[#allocation8 + $0x220] sm:$0xff]  ;;  %v181_v54 = vld [vmem:[#allocation8 + $0x290] sm:$0xff] }
  0x68   :  { %288 = vmatpush2.msra.mxu0 %v211_v9  ;;  %358 = vmatprep.subr.mxu1 %v214_v18  ;;  %v164_v55 = vld [vmem:[#allocation8 + $0x208] sm:$0xff]  ;;  %v178_v56 = vld [vmem:[#allocation8 + $0x278] sm:$0xff]  ;;  %v163_v57 = vld [vmem:[#allocation8 + $0x200] sm:$0xff] }
  0x69   :  { %289 = vmatprep.subr.mxu0 %v208_v11  ;;  %359 = vmatpush2.msra.mxu1 %v213_v20  ;;  %v177_v58 = vld [vmem:[#allocation8 + $0x270] sm:$0xff]  ;;  %v96_v59 = vld [vmem:[#allocation2] sm:$0xff]  ;;  %v482_v63 = vld [vmem:[#allocation10 + $0x1e8] sm:$0xff] }
  0x6a   :  { %290 = vmatpush2.msra.mxu0 %v207_v13  ;;  %360 = vmatprep.subr.mxu1 %v210_v22  ;;  %v174_v60 = vld [vmem:[#allocation8 + $0x258] sm:$0xff]  ;;  %v173_v61 = vld [vmem:[#allocation8 + $0x250] sm:$0xff]  ;;  %v481_v1 = vld [vmem:[#allocation10 + $0x1e0] sm:$0xff] }
  0x6b   :  { %291 = vmatprep.subr.mxu0 %v204_v15  ;;  %361 = vmatpush2.msra.mxu1 %v209_v24  ;;  %v170_v62 = vld [vmem:[#allocation8 + $0x238] sm:$0xff]  ;;  %v169_v0 = vld [vmem:[#allocation8 + $0x230] sm:$0xff]  ;;  %v478_v3 = vld [vmem:[#allocation10 + $0x1c8] sm:$0xff] }
  0x6c   :  { %292 = vmatpush2.msra.mxu0 %v203_v17  ;;  %362 = vmatprep.subr.mxu1 %v206_v26  ;;  %v166_v2 = vld [vmem:[#allocation8 + $0x218] sm:$0xff]  ;;  %v165_v4 = vld [vmem:[#allocation8 + $0x210] sm:$0xff]  ;;  %v477_v5 = vld [vmem:[#allocation10 + $0x1c0] sm:$0xff] }
  0x6d   :  { %293 = vmatprep.subr.mxu0 %v200_v19  ;;  %363 = vmatpush2.msra.mxu1 %v205_v28  ;;  %v484_v6 = vld [vmem:[#allocation10 + $0x1f8] sm:$0xff]  ;;  %v483_v7 = vld [vmem:[#allocation10 + $0x1f0] sm:$0xff]  ;;  %v474_v8 = vld [vmem:[#allocation10 + $0x1a8] sm:$0xff] }
  0x6e   :  { %294 = vmatpush2.msra.mxu0 %v199_v21  ;;  %364 = vmatprep.subr.mxu1 %v202_v30  ;;  %v480_v9 = vld [vmem:[#allocation10 + $0x1d8] sm:$0xff]  ;;  %v473_v10 = vld [vmem:[#allocation10 + $0x1a0] sm:$0xff]  ;;  %v479_v11 = vld [vmem:[#allocation10 + $0x1d0] sm:$0xff] }
  0x6f   :  { %295 = vmatprep.subr.mxu0 %v196_v23  ;;  %365 = vmatpush2.msra.mxu1 %v201_v32  ;;  %v470_v12 = vld [vmem:[#allocation10 + $0x188] sm:$0xff]  ;;  %v476_v13 = vld [vmem:[#allocation10 + $0x1b8] sm:$0xff]  ;;  %v475_v14 = vld [vmem:[#allocation10 + $0x1b0] sm:$0xff] }
  0x70   :  { %296 = vmatpush2.msra.mxu0 %v195_v25  ;;  %366 = vmatprep.subr.mxu1 %v198_v34  ;;  %v472_v15 = vld [vmem:[#allocation10 + $0x198] sm:$0xff]  ;;  %v469_v16 = vld [vmem:[#allocation10 + $0x180] sm:$0xff]  ;;  %v471_v17 = vld [vmem:[#allocation10 + $0x190] sm:$0xff] }
  0x71   :  { %297 = vmatprep.subr.mxu0 %v192_v27  ;;  %313 = vmatprep.mubr.f32.mxu0 %v97_v36  ;;  %v466_v18 = vld [vmem:[#allocation10 + $0x168] sm:$0xff]  ;;  %v468_v19 = vld [vmem:[#allocation10 + $0x178] sm:$0xff]  ;;  %v465_v20 = vld [vmem:[#allocation10 + $0x160] sm:$0xff] }
  0x72   :  { %298 = vmatpush2.msra.mxu0 %v191_v29  ;;  %367 = vmatpush2.msra.mxu1 %v197_v38  ;;  %v467_v21 = vld [vmem:[#allocation10 + $0x170] sm:$0xff]  ;;  %v462_v22 = vld [vmem:[#allocation10 + $0x148] sm:$0xff]  ;;  %v464_v23 = vld [vmem:[#allocation10 + $0x158] sm:$0xff] }
  0x73   :  { %299 = vmatprep.subr.mxu0 %v188_v31  ;;  %368 = vmatprep.subr.mxu1 %v194_v40  ;;  %v461_v24 = vld [vmem:[#allocation10 + $0x140] sm:$0xff]  ;;  %v463_v25 = vld [vmem:[#allocation10 + $0x150] sm:$0xff]  ;;  %v458_v26 = vld [vmem:[#allocation10 + $0x128] sm:$0xff] }
  0x74   :  { %300 = vmatpush2.msra.mxu0 %v187_v33  ;;  %369 = vmatpush2.msra.mxu1 %v193_v42  ;;  %v460_v27 = vld [vmem:[#allocation10 + $0x138] sm:$0xff]  ;;  %v457_v28 = vld [vmem:[#allocation10 + $0x120] sm:$0xff]  ;;  %v459_v29 = vld [vmem:[#allocation10 + $0x130] sm:$0xff] }
  0x75   :  { %301 = vmatprep.subr.mxu0 %v184_v35  ;;  %370 = vmatprep.subr.mxu1 %v190_v44  ;;  %v454_v30 = vld [vmem:[#allocation10 + $0x108] sm:$0xff]  ;;  %v456_v31 = vld [vmem:[#allocation10 + $0x118] sm:$0xff]  ;;  %v453_v32 = vld [vmem:[#allocation10 + $0x100] sm:$0xff] }
  0x76   :  { %302 = vmatpush2.msra.mxu0 %v183_v37  ;;  %371 = vmatpush2.msra.mxu1 %v189_v46  ;;  %v455_v33 = vld [vmem:[#allocation10 + $0x110] sm:$0xff]  ;;  %v450_v34 = vld [vmem:[#allocation10 + $0xe8] sm:$0xff]  ;;  %v452_v35 = vld [vmem:[#allocation10 + $0xf8] sm:$0xff] }
  0x77   :  { %303 = vmatprep.subr.mxu0 %v180_v39  ;;  %372 = vmatprep.subr.mxu1 %v186_v48  ;;  %v451_v37 = vld [vmem:[#allocation10 + $0xf0] sm:$0xff]  ;;  %v446_v38 = vld [vmem:[#allocation10 + $0xc8] sm:$0xff]  ;;  %v448_v39 = vld [vmem:[#allocation10 + $0xd8] sm:$0xff] }
  0x78   :  { %304 = vmatpush2.msra.mxu0 %v179_v41  ;;  %373 = vmatpush2.msra.mxu1 %v185_v50  ;;  %v445_v40 = vld [vmem:[#allocation10 + $0xc0] sm:$0xff]  ;;  %v447_v41 = vld [vmem:[#allocation10 + $0xd0] sm:$0xff]  ;;  %v442_v42 = vld [vmem:[#allocation10 + $0xa8] sm:$0xff] }
  0x79   :  { %305 = vmatprep.subr.mxu0 %v176_v43  ;;  %374 = vmatprep.subr.mxu1 %v182_v52  ;;  %v444_v43 = vld [vmem:[#allocation10 + $0xb8] sm:$0xff]  ;;  %v441_v44 = vld [vmem:[#allocation10 + $0xa0] sm:$0xff]  ;;  %v438_v46 = vld [vmem:[#allocation10 + $0x88] sm:$0xff] }
  0x7a   :  { %306 = vmatpush2.msra.mxu0 %v175_v45  ;;  %375 = vmatpush2.msra.mxu1 %v181_v54  ;;  %v443_v45 = vld [vmem:[#allocation10 + $0xb0] sm:$0xff]  ;;  %v437_v48 = vld [vmem:[#allocation10 + $0x80] sm:$0xff]  ;;  %v434_v50 = vld [vmem:[#allocation10 + $0x68] sm:$0xff] }
  0x7b   :  { %307 = vmatprep.subr.mxu0 %v172_v47  ;;  %376 = vmatprep.subr.mxu1 %v178_v56  ;;  %v440_v47 = vld [vmem:[#allocation10 + $0x98] sm:$0xff]  ;;  %v433_v52 = vld [vmem:[#allocation10 + $0x60] sm:$0xff]  ;;  %v430_v54 = vld [vmem:[#allocation10 + $0x48] sm:$0xff] }
  0x7c   :  { %308 = vmatpush2.msra.mxu0 %v171_v49  ;;  %377 = vmatpush2.msra.mxu1 %v177_v58  ;;  %v439_v49 = vld [vmem:[#allocation10 + $0x90] sm:$0xff]  ;;  %v429_v56 = vld [vmem:[#allocation10 + $0x40] sm:$0xff]  ;;  %v426_v58 = vld [vmem:[#allocation10 + $0x28] sm:$0xff] }
  0x7d   :  { %309 = vmatprep.subr.mxu0 %v168_v51  ;;  %378 = vmatprep.subr.mxu1 %v174_v60  ;;  %v436_v51 = vld [vmem:[#allocation10 + $0x78] sm:$0xff]  ;;  %v425_v60 = vld [vmem:[#allocation10 + $0x20] sm:$0xff] }
  0x7e   :  { %310 = vmatpush2.msra.mxu0 %v167_v53  ;;  %379 = vmatpush2.msra.mxu1 %v173_v61  ;;  %v435_v53 = vld [vmem:[#allocation10 + $0x70] sm:$0xff] }
  0x7f   :  { %311 = vmatprep.subr.mxu0 %v164_v55  ;;  %384 = vmatprep.mubr.f32.mxu1 %v97_v36  ;;  %v449_v36 = vld [vmem:[#allocation10 + $0xe0] sm:$0xff]  ;;  %v432_v55 = vld [vmem:[#allocation10 + $0x58] sm:$0xff]  ;;  %v427_v61 = vld [vmem:[#allocation10 + $0x30] sm:$0xff] }
  0x80   :  { %312 = vmatpush2.msra.mxu0 %v163_v57  ;;  %380 = vmatprep.subr.mxu1 %v170_v62  ;;  %v431_v57 = vld [vmem:[#allocation10 + $0x50] sm:$0xff]  ;;  %v422_v62 = vld [vmem:[#allocation10 + $0x8] sm:$0xff] }
  0x81   :  { %314 = vmatmul.mubr.f32.vlgmr.msra.gmra.mxu0 %v96_v59  ;;  %571 = vmatprep.subr.mxu0 %v482_v63  ;;  %v424_v63 = vld [vmem:[#allocation10 + $0x18] sm:$0xff] }
  0x82   :  { %381 = vmatpush2.msra.mxu1 %v169_v0  ;;  %572 = vmatpush1.msra.mxu0 %v481_v1  ;;  %v421_v0 = vld [vmem:[#allocation10] sm:$0xff]  ;;  %v423_v1 = vld [vmem:[#allocation10 + $0x10] sm:$0xff] }
  0x83   :  { %382 = vmatprep.subr.mxu1 %v166_v2  ;;  %573 = vmatprep.subr.mxu0 %v478_v3  ;;  %v546_v2 = vld [vmem:[#allocation10 + $0x3e8] sm:$0xff]  ;;  %v548_v3 = vld [vmem:[#allocation10 + $0x3f8] sm:$0xff] }
  0x84   :  { %383 = vmatpush2.msra.mxu1 %v165_v4  ;;  %574 = vmatpush1.msra.mxu0 %v477_v5  ;;  %v545_v4 = vld [vmem:[#allocation10 + $0x3e0] sm:$0xff]  ;;  %v547_v5 = vld [vmem:[#allocation10 + $0x3f0] sm:$0xff] }
  0x85   :  { %385 = vmatmul.mubr.f32.vlgmr.msra.gmra.mxu1 %v96_v59  ;;  %642 = vmatprep.subr.mxu1 %v484_v6  ;;  %v428_v59 = vld [vmem:[#allocation10 + $0x38] sm:$0xff]  ;;  %v542_v6 = vld [vmem:[#allocation10 + $0x3c8] sm:$0xff] }
  0x86   :  { %643 = vmatpush1.msra.mxu1 %v483_v7  ;;  %575 = vmatprep.subr.mxu0 %v474_v8  ;;  %v544_v7 = vld [vmem:[#allocation10 + $0x3d8] sm:$0xff]  ;;  %v541_v8 = vld [vmem:[#allocation10 + $0x3c0] sm:$0xff] }
  0x87   :  { %644 = vmatprep.subr.mxu1 %v480_v9  ;;  %576 = vmatpush1.msra.mxu0 %v473_v10  ;;  %v543_v9 = vld [vmem:[#allocation10 + $0x3d0] sm:$0xff]  ;;  %v538_v10 = vld [vmem:[#allocation10 + $0x3a8] sm:$0xff] }
  0x88   :  { %645 = vmatpush1.msra.mxu1 %v479_v11  ;;  %577 = vmatprep.subr.mxu0 %v470_v12  ;;  %v540_v11 = vld [vmem:[#allocation10 + $0x3b8] sm:$0xff]  ;;  %v537_v12 = vld [vmem:[#allocation10 + $0x3a0] sm:$0xff] }
  0x89   :  { %646 = vmatprep.subr.mxu1 %v476_v13  ;;  %578 = vmatpush1.msra.mxu0 %v469_v16  ;;  %v539_v13 = vld [vmem:[#allocation10 + $0x3b0] sm:$0xff]  ;;  %v533_v16 = vld [vmem:[#allocation10 + $0x380] sm:$0xff] }
  0x8a   :  { %647 = vmatpush1.msra.mxu1 %v475_v14  ;;  %579 = vmatprep.subr.mxu0 %v466_v18  ;;  %v534_v14 = vld [vmem:[#allocation10 + $0x388] sm:$0xff] }
  0x8b   :  { %648 = vmatprep.subr.mxu1 %v472_v15  ;;  %580 = vmatpush1.msra.mxu0 %v465_v20  ;;  %v536_v15 = vld [vmem:[#allocation10 + $0x398] sm:$0xff]  ;;  %v530_v18 = vld [vmem:[#allocation10 + $0x368] sm:$0xff]  ;;  %v529_v20 = vld [vmem:[#allocation10 + $0x360] sm:$0xff] }
  0x8c   :  { %649 = vmatpush1.msra.mxu1 %v471_v17  ;;  %581 = vmatprep.subr.mxu0 %v462_v22  ;;  %v535_v17 = vld [vmem:[#allocation10 + $0x390] sm:$0xff]  ;;  %v526_v22 = vld [vmem:[#allocation10 + $0x348] sm:$0xff] }
  0x8d   :  { %650 = vmatprep.subr.mxu1 %v468_v19  ;;  %582 = vmatpush1.msra.mxu0 %v461_v24  ;;  %v532_v19 = vld [vmem:[#allocation10 + $0x378] sm:$0xff]  ;;  %v525_v24 = vld [vmem:[#allocation10 + $0x340] sm:$0xff] }
  0x8e   :  { %651 = vmatpush1.msra.mxu1 %v467_v21  ;;  %583 = vmatprep.subr.mxu0 %v458_v26  ;;  %v531_v21 = vld [vmem:[#allocation10 + $0x370] sm:$0xff]  ;;  %v522_v26 = vld [vmem:[#allocation10 + $0x328] sm:$0xff] }
  0x8f   :  { %652 = vmatprep.subr.mxu1 %v464_v23  ;;  %584 = vmatpush1.msra.mxu0 %v457_v28  ;;  %v528_v23 = vld [vmem:[#allocation10 + $0x358] sm:$0xff]  ;;  %v521_v28 = vld [vmem:[#allocation10 + $0x320] sm:$0xff] }
  0x90   :  { %653 = vmatpush1.msra.mxu1 %v463_v25  ;;  %585 = vmatprep.subr.mxu0 %v454_v30  ;;  %v527_v25 = vld [vmem:[#allocation10 + $0x350] sm:$0xff]  ;;  %v518_v30 = vld [vmem:[#allocation10 + $0x308] sm:$0xff] }
  0x91   :  { %654 = vmatprep.subr.mxu1 %v460_v27  ;;  %586 = vmatpush1.msra.mxu0 %v453_v32  ;;  %v524_v27 = vld [vmem:[#allocation10 + $0x338] sm:$0xff]  ;;  %v517_v32 = vld [vmem:[#allocation10 + $0x300] sm:$0xff] }
  0x92   :  { %655 = vmatpush1.msra.mxu1 %v459_v29  ;;  %587 = vmatprep.subr.mxu0 %v450_v34  ;;  %v523_v29 = vld [vmem:[#allocation10 + $0x330] sm:$0xff]  ;;  %v514_v34 = vld [vmem:[#allocation10 + $0x2e8] sm:$0xff] }
  0x93   :  { %656 = vmatprep.subr.mxu1 %v456_v31  ;;  %588 = vmatpush1.msra.mxu0 %v449_v36  ;;  %v520_v31 = vld [vmem:[#allocation10 + $0x318] sm:$0xff]  ;;  %v513_v36 = vld [vmem:[#allocation10 + $0x2e0] sm:$0xff] }
  0x94   :  { %657 = vmatpush1.msra.mxu1 %v455_v33  ;;  %589 = vmatprep.subr.mxu0 %v446_v38  ;;  %v519_v33 = vld [vmem:[#allocation10 + $0x310] sm:$0xff]  ;;  %v510_v38 = vld [vmem:[#allocation10 + $0x2c8] sm:$0xff] }
  0x95   :  { %658 = vmatprep.subr.mxu1 %v452_v35  ;;  %590 = vmatpush1.msra.mxu0 %v445_v40  ;;  %v516_v35 = vld [vmem:[#allocation10 + $0x2f8] sm:$0xff]  ;;  %v509_v40 = vld [vmem:[#allocation10 + $0x2c0] sm:$0xff] }
  0x96   :  { %659 = vmatpush1.msra.mxu1 %v451_v37  ;;  %591 = vmatprep.subr.mxu0 %v442_v42  ;;  %v515_v37 = vld [vmem:[#allocation10 + $0x2f0] sm:$0xff]  ;;  %v506_v42 = vld [vmem:[#allocation10 + $0x2a8] sm:$0xff] }
  0x97   :  { %660 = vmatprep.subr.mxu1 %v448_v39  ;;  %592 = vmatpush1.msra.mxu0 %v441_v44  ;;  %v512_v39 = vld [vmem:[#allocation10 + $0x2d8] sm:$0xff]  ;;  %v505_v44 = vld [vmem:[#allocation10 + $0x2a0] sm:$0xff] }
  0x98   :  { %661 = vmatpush1.msra.mxu1 %v447_v41  ;;  %593 = vmatprep.subr.mxu0 %v438_v46  ;;  %v511_v41 = vld [vmem:[#allocation10 + $0x2d0] sm:$0xff]  ;;  %v502_v46 = vld [vmem:[#allocation10 + $0x288] sm:$0xff] }
  0x99   :  { %662 = vmatprep.subr.mxu1 %v444_v43  ;;  %594 = vmatpush1.msra.mxu0 %v437_v48  ;;  %v508_v43 = vld [vmem:[#allocation10 + $0x2b8] sm:$0xff]  ;;  %v501_v48 = vld [vmem:[#allocation10 + $0x280] sm:$0xff] }
  0x9a   :  { %663 = vmatpush1.msra.mxu1 %v443_v45  ;;  %595 = vmatprep.subr.mxu0 %v434_v50  ;;  %v507_v45 = vld [vmem:[#allocation10 + $0x2b0] sm:$0xff]  ;;  %v498_v50 = vld [vmem:[#allocation10 + $0x268] sm:$0xff] }
  0x9b   :  { %664 = vmatprep.subr.mxu1 %v440_v47  ;;  %596 = vmatpush1.msra.mxu0 %v433_v52  ;;  %v504_v47 = vld [vmem:[#allocation10 + $0x298] sm:$0xff]  ;;  %v497_v52 = vld [vmem:[#allocation10 + $0x260] sm:$0xff] }
  0x9c   :  { %665 = vmatpush1.msra.mxu1 %v439_v49  ;;  %597 = vmatprep.subr.mxu0 %v430_v54  ;;  %v503_v49 = vld [vmem:[#allocation10 + $0x290] sm:$0xff]  ;;  %v494_v54 = vld [vmem:[#allocation10 + $0x248] sm:$0xff] }
  0x9d   :  { %666 = vmatprep.subr.mxu1 %v436_v51  ;;  %598 = vmatpush1.msra.mxu0 %v429_v56  ;;  %v500_v51 = vld [vmem:[#allocation10 + $0x278] sm:$0xff]  ;;  %v493_v56 = vld [vmem:[#allocation10 + $0x240] sm:$0xff] }
  0x9e   :  { %667 = vmatpush1.msra.mxu1 %v435_v53  ;;  %599 = vmatprep.subr.mxu0 %v426_v58  ;;  %v499_v53 = vld [vmem:[#allocation10 + $0x270] sm:$0xff]  ;;  %v490_v58 = vld [vmem:[#allocation10 + $0x228] sm:$0xff] }
  0x9f   :  { %668 = vmatprep.subr.mxu1 %v432_v55  ;;  %600 = vmatpush1.msra.mxu0 %v425_v60  ;;  %v496_v55 = vld [vmem:[#allocation10 + $0x258] sm:$0xff]  ;;  %v489_v60 = vld [vmem:[#allocation10 + $0x220] sm:$0xff] }
  0xa0   :  { %669 = vmatpush1.msra.mxu1 %v431_v57  ;;  %601 = vmatprep.subr.mxu0 %v422_v62  ;;  %v495_v57 = vld [vmem:[#allocation10 + $0x250] sm:$0xff]  ;;  %v486_v62 = vld [vmem:[#allocation10 + $0x208] sm:$0xff] }
  0xa1   :  { %670 = vmatprep.subr.mxu1 %v428_v59  ;;  %602 = vmatpush1.msra.mxu0 %v421_v0  ;;  %v492_v59 = vld [vmem:[#allocation10 + $0x238] sm:$0xff]  ;;  %v485_v0 = vld [vmem:[#allocation10 + $0x200] sm:$0xff] }
  0xa2   :  { %671 = vmatpush1.msra.mxu1 %v427_v61  ;;  %603 = vmatprep.subr.mxu0 %v546_v2  ;;  %v491_v61 = vld [vmem:[#allocation10 + $0x230] sm:$0xff] }
  0xa3   :  { %672 = vmatprep.subr.mxu1 %v424_v63  ;;  %604 = vmatpush2.msra.mxu0 %v545_v4  ;;  %v488_v63 = vld [vmem:[#allocation10 + $0x218] sm:$0xff]  ;;  %v487_v2 = vld [vmem:[#allocation10 + $0x210] sm:$0xff] }
  0xa4   :  { %673 = vmatpush1.msra.mxu1 %v423_v1  ;;  %605 = vmatprep.subr.mxu0 %v542_v6  ;;  %v418_v1 = vld [vmem:[#allocation5 + $0x8] sm:$0xff]  ;;  %v227_v6 = vld [vmem:[%s1087_s5] sm:$0xf] }
  0xa5   :  { %674 = vmatprep.subr.mxu1 %v548_v3  ;;  %606 = vmatpush2.msra.mxu0 %v541_v8  ;;  %v229_v3 = vlaneseq }
  0xa6   :  { %675 = vmatpush2.msra.mxu1 %v547_v5  ;;  %607 = vmatprep.subr.mxu0 %v538_v10 }
  0xa7   :  { %676 = vmatprep.subr.mxu1 %v544_v7  ;;  %608 = vmatpush2.msra.mxu0 %v537_v12  ;;  %v1058_v4 = vshrl.u32 %v229_v3, 7 }
  0xa8   :  { %677 = vmatpush2.msra.mxu1 %v543_v9  ;;  %609 = vmatprep.subr.mxu0 %v534_v14 }
  0xa9   :  { %678 = vmatprep.subr.mxu1 %v540_v11  ;;  %610 = vmatpush2.msra.mxu0 %v533_v16  ;;  %v231_v5 = vsub.s32 0, %v1058_v4  ;;  %v235_v7 = vsub.s32 1, %v1058_v4 }
  0xaa   :  { %679 = vmatpush2.msra.mxu1 %v539_v13  ;;  %611 = vmatprep.subr.mxu0 %v530_v18  ;;  %v239_v18 = vsub.s32 2, %v1058_v4 }
  0xab   :  { %680 = vmatprep.subr.mxu1 %v536_v15  ;;  %612 = vmatpush2.msra.mxu0 %v529_v20  ;;  %v232_v8 = vrot.slane %v227_v6, %v231_v5  ;;  %v236_v9 = vrot.slane %v227_v6, %v235_v7  ;;  %v243_v15 = vsub.s32 3, %v1058_v4 }
  0xac   :  { %681 = vmatpush2.msra.mxu1 %v535_v17  ;;  %613 = vmatprep.subr.mxu0 %v526_v22 }
  0xad   :  { %682 = vmatprep.subr.mxu1 %v532_v19  ;;  %614 = vmatpush2.msra.mxu0 %v525_v24  ;;  %v244_v19 = vrot.slane %v227_v6, %v243_v15 }
  0xae   :  { %683 = vmatpush2.msra.mxu1 %v531_v21  ;;  %615 = vmatprep.subr.mxu0 %v522_v26  ;;  %v240_v21 = vrot.slane %v227_v6, %v239_v18 }
  0xaf   :  { %684 = vmatprep.subr.mxu1 %v528_v23  ;;  %616 = vmatpush2.msra.mxu0 %v521_v28 }
  0xb0   :  { %685 = vmatpush2.msra.mxu1 %v527_v25  ;;  %617 = vmatprep.subr.mxu0 %v518_v30 }
  0xb1   :  { %686 = vmatprep.subr.mxu1 %v524_v27  ;;  %618 = vmatpush2.msra.mxu0 %v517_v32  ;;  %v98_v32 = vld [vmem:[#allocation7] sm:$0xff] }
  0xb2   :  { %687 = vmatpush2.msra.mxu1 %v523_v29  ;;  %619 = vmatprep.subr.mxu0 %v514_v34 }
  0xb3   :  { %688 = vmatprep.subr.mxu1 %v520_v31  ;;  %620 = vmatpush2.msra.mxu0 %v513_v36 }
  0xb4   :  { %689 = vmatpush2.msra.mxu1 %v519_v33  ;;  %621 = vmatprep.subr.mxu0 %v510_v38 }
  0xb5   :  { %690 = vmatprep.subr.mxu1 %v516_v35  ;;  %622 = vmatpush2.msra.mxu0 %v509_v40 }
  0xb6   :  { %691 = vmatpush2.msra.mxu1 %v515_v37  ;;  %623 = vmatprep.subr.mxu0 %v506_v42 }
  0xb7   :  { %692 = vmatprep.subr.mxu1 %v512_v39  ;;  %624 = vmatpush2.msra.mxu0 %v505_v44 }
  0xb8   :  { %693 = vmatpush2.msra.mxu1 %v511_v41  ;;  %625 = vmatprep.subr.mxu0 %v502_v46  ;;  %v549_v41 = vld [vmem:[%s1088_s6] sm:$0xf]  ;;  %s984_s6 = smov [#allocation12]  }
  0xb9   :  { %694 = vmatprep.subr.mxu1 %v508_v43  ;;  %626 = vmatpush2.msra.mxu0 %v501_v48  ;;  %v554_v42 = vrot.slane %v549_v41, %v231_v5  ;;  %v558_v43 = vrot.slane %v549_v41, %v235_v7  ;;  %s758_s12 = sshll.u32 %s984_s6, 4  ;;  %s759_s12 = int_to_ptr.vmem [resolvable:$true] %s758_s12 }
  0xba   :  { %695 = vmatpush2.msra.mxu1 %v507_v45  ;;  %627 = vmatprep.subr.mxu0 %v498_v50  ;;  %s925_s13 = scalar_lea.vmem %s759_s12, 256  ;;  %p930_p12 = scmp.lt.s32.totalorder %s759_s12, %s759_s12 }
  0xbb   :  { %696 = vmatprep.subr.mxu1 %v504_v47  ;;  %628 = vmatpush2.msra.mxu0 %v497_v52  ;;  %p926_p11 = scmp.ne.s32.totalorder %s759_s12, %s925_s13  ;;  %p931_p13 = scmp.lt.s32.totalorder %s925_s13, %s925_s13 }
  0xbc   :  { %697 = vmatpush2.msra.mxu1 %v503_v49  ;;  %629 = vmatprep.subr.mxu0 %v494_v54  ;;  %v562_v54 = vrot.slane %v549_v41, %v239_v18 }
  0xbd   :  { %698 = vmatprep.subr.mxu1 %v500_v51  ;;  %630 = vmatpush2.msra.mxu0 %v493_v56  ;;  %v566_v51 = vrot.slane %v549_v41, %v243_v15  ;;  %p932_p0 = por %p931_p13, %p930_p12 }
  0xbe   :  { %699 = vmatpush2.msra.mxu1 %v499_v53  ;;  %631 = vmatprep.subr.mxu0 %v490_v58 }
  0xbf   :  { %700 = vmatprep.subr.mxu1 %v496_v55  ;;  %632 = vmatpush2.msra.mxu0 %v489_v60  ;;  %p933_p1 = pnand %p932_p0, %p926_p11 }
  0xc0   :  { %701 = vmatpush2.msra.mxu1 %v495_v57  ;;  %633 = vmatprep.subr.mxu0 %v486_v62 }
  0xc1   :  { %702 = vmatprep.subr.mxu1 %v492_v59  ;;  %634 = vmatpush2.msra.mxu0 %v485_v0 }
  0xc2   :  { %703 = vmatpush2.msra.mxu1 %v491_v61  ;;  %635 = vmatprep.mubr.f32.mxu0 %v418_v1 }
  0xc3   :  { %704 = vmatprep.subr.mxu1 %v488_v63  ;;  %706 = vmatprep.mubr.f32.mxu1 %v418_v1  ;;  %v420_v63 = vld [vmem:[#allocation7 + $0x8] sm:$0xff] }
  0xc4   :  { %705 = vmatpush2.msra.mxu1 %v487_v2 }
 0x141   :  { %v315_v10 = vpop.f32.mrf.mxu0 }
 0x142   :  { %v316_v11 = vadd.f32 %v315_v10, %v232_v8 }
 0x143   :  { %v317_v12 = vpop.f32.mrf.mxu0 }
 0x144   :  { %v776_v13 = vmul.f32 -1.442695, %v316_v11  ;;  %v318_v14 = vadd.f32 %v317_v12, %v236_v9 }
 0x145   :  { %v386_v17 = vpop.f32.mrf.mxu1 }
 0x146   :  { %793 = vpow2.f32 %v776_v13  ;;  %v777_v16 = vmul.f32 -1.442695, %v318_v14  ;;  %v387_v23 = vadd.f32 %v386_v17, %v240_v21 }
 0x147   :  { %v388_v20 = vpop.f32.mrf.mxu1 }
 0x148   :  { %795 = vpow2.f32 %v777_v16  ;;  %v389_v22 = vadd.f32 %v388_v20, %v244_v19 }
 0x149   :  { %797 = vtanh.f32 %v387_v23 }
 0x14a   :  { %v778_v24 = vmul.f32 -1.442695, %v389_v22 }
 0x14c   :  { %799 = vpow2.f32 %v778_v24 }
 0x153   :  { %v794_v25 = vpop.eup %793 }
 0x154   :  { %v394_v26 = vadd.f32 1.0, %v794_v25 }
 0x155   :  { %v796_v27 = vpop.eup %795 }
 0x156   :  { %801 = vrcp.f32 %v394_v26  ;;  %v400_v28 = vadd.f32 1.0, %v796_v27  ;;  %v798_v29 = vpop.eup %797 }
 0x158   :  { %803 = vrcp.f32 %v400_v28 }
 0x159   :  { %v800_v30 = vpop.eup %799 }
 0x15a   :  { %v407_v34 = vadd.f32 1.0, %v800_v30 }
 0x15c   :  { %805 = vrcp.f32 %v407_v34 }
 0x163   :  { %v802_v31 = vpop.eup %801 }
 0x164   :  { %v411_v36 = vmul.f32 %v802_v31, %v798_v29 }
 0x165   :  { %v804_v33 = vpop.eup %803 }
 0x166   :  { %v410_v35 = vmul.f32 %v804_v33, %v98_v32 }
 0x168   :  { %v412_v37 = vadd.f32 %v411_v36, %v410_v35 }
 0x169   :  { %v806_v38 = vpop.eup %805 }
 0x16a   :  { %807 = vtanh.f32 %v412_v37  ;;  %416 = vst [vmem:[#allocation12] sm:$0xff] %v412_v37 }
 0x177   :  { %v808_v39 = vpop.eup %807 }
 0x178   :  { %v414_v40 = vmul.f32 %v808_v39, %v806_v38 }
 0x17a   :  { %636 = vmatmul.mubr.f32.vlgmr.msra.gmra.mxu0 %v414_v40  ;;  %415 = vst [vmem:[#allocation11] sm:$0xff] %v414_v40  ;;  %707 = vmatmul.mubr.f32.vlgmr.msra.gmra.mxu1 %v414_v40 }
 0x23a   :  { %v637_v44 = vpop.f32.mrf.mxu0  ;;  %v708_v49 = vpop.f32.mrf.mxu1 }
 0x23b   :  { %v638_v45 = vadd.f32 %v637_v44, %v554_v42  ;;  %v709_v57 = vadd.f32 %v708_v49, %v562_v54 }
 0x23c   :  { %v639_v46 = vpop.f32.mrf.mxu0  ;;  %v710_v52 = vpop.f32.mrf.mxu1 }
 0x23d   :  { %v779_v47 = vmul.f32 -1.442695, %v638_v45  ;;  %v640_v48 = vadd.f32 %v639_v46, %v558_v43  ;;  %v711_v53 = vadd.f32 %v710_v52, %v566_v51 }
 0x23f   :  { %809 = vpow2.f32 %v779_v47  ;;  %v780_v50 = vmul.f32 -1.442695, %v640_v48  ;;  %v781_v55 = vmul.f32 -1.442695, %v711_v53 }
 0x241   :  { %811 = vpow2.f32 %v780_v50 }
 0x242   :  { %813 = vpow2.f32 %v781_v55 }
 0x24c   :  { %v810_v56 = vpop.eup %809 }
 0x24d   :  { %v716_v58 = vadd.f32 1.0, %v810_v56 }
 0x24e   :  { %v812_v59 = vpop.eup %811 }
 0x24f   :  { %815 = vrcp.f32 %v716_v58  ;;  %v722_v60 = vadd.f32 1.0, %v812_v59  ;;  %v814_v61 = vpop.eup %813 }
 0x250   :  { %817 = vtanh.f32 %v709_v57  ;;  %v729_v2 = vadd.f32 1.0, %v814_v61 }
 0x251   :  { %819 = vrcp.f32 %v722_v60 }
 0x252   :  { %821 = vrcp.f32 %v729_v2 }
 0x25c   :  { %v816_v62 = vpop.eup %815 }
 0x25d   :  { %v818_v0 = vpop.eup %817 }
 0x25e   :  { %v820_v1 = vpop.eup %819  ;;  %v733_v3 = vmul.f32 %v818_v0, %v816_v62 }
 0x25f   :  { %v732_v4 = vmul.f32 %v820_v1, %v420_v63 }
 0x261   :  { %v734_v5 = vadd.f32 %v733_v3, %v732_v4 }
 0x263   :  { %823 = vtanh.f32 %v734_v5  ;;  %740 = vst [vmem:[#allocation12 + $0x8] sm:$0xff] %v734_v5 }
 0x264   :  { %936 = shalt.err (!%p933_p1)
}
 0x265   :  { %764 = dma.vmem_to_hbm [thread:$0]  %s759_s12, 256, %s1090_s8, [#allocation13], %s976_s30, %s976_s30, %s977_s9   ;;  %v822_v6 = vpop.eup %821 }
 0x266   :  { %s985_s16 = smov [#allocation11]  }
 0x267   :  { %s746_s17 = sshll.u32 %s985_s16, 4  ;;  %s747_s17 = int_to_ptr.vmem [resolvable:$true] %s746_s17 }
 0x268   :  { %s945_s18 = scalar_lea.vmem %s747_s17, 256  ;;  %p950_p3 = scmp.lt.s32.totalorder %s747_s17, %s747_s17 }
 0x269   :  { %p946_p2 = scmp.ne.s32.totalorder %s747_s17, %s945_s18  ;;  %p951_p4 = scmp.lt.s32.totalorder %s945_s18, %s945_s18 }
 0x26b   :  { %p952_p5 = por %p951_p4, %p950_p3 }
 0x26d   :  { %p953_p6 = pnand %p952_p5, %p946_p2 }
 0x270   :  { %v824_v7 = vpop.eup %823 }
 0x271   :  { %v736_v8 = vmul.f32 %v824_v7, %v822_v6 }
 0x273   :  { %738 = vst [vmem:[#allocation11 + $0x8] sm:$0xff] %v736_v8 }
 0x274   :  { %956 = shalt.err (!%p953_p6)
}
 0x275   :  { %752 = dma.vmem_to_hbm [thread:$0]  %s747_s17, 256, %s1089_s7, [#allocation4], %s976_s30, %s976_s30, %s977_s9  }
 0x276   :  { %971 = dma.done.wait [#allocation4], 256  }
 0x277   :  { %972 = vsyncadd [#allocation4], 4294967040 }
 0x278   :  { %973 = dma.done.wait [#allocation13], 256  }
 0x279   :  { %974 = vsyncadd [#allocation13], 4294967040 }
 0x27a   :  { %771 = vsyncpa [#allocation3], 1 }
 0x27b   :  { %772 = vsyncpa [#allocation6], 1 }
 0x27c   :  { %773 = vsyncpa [#allocation9], 1 }
 0x27d   :  { %774 = vsyncpa [#allocation4], 1 }
 0x27e   :  { %775 = vsyncpa [#allocation13], 1 }

</bundles_post_ra>
